<compile_context>
chip_gen: v5e
topology: v5e:2x2
jax: 0.10.0
libtpu: 0.0.40
codegen_flags: <defaults>
</compile_context>

<pallas_src>
import math

import jax
import jax.numpy as jnp
from jax.experimental import pallas as pl
from jax.experimental.pallas import tpu as pltpu


def _round_up(x: int, m: int) -> int:
    return ((x + m - 1) // m) * m


def _round_down(x: int, m: int) -> int:
    return (x // m) * m


def _tensorcores_per_device() -> int:
    """Best-effort count of TensorCores per JAX device (v7x/megacore -> 2)."""
    try:
        d = jax.devices()[0]
        n = getattr(d, "num_cores", None)
        if n:
            return max(1, int(n))
        kind = str(getattr(d, "device_kind", "")).lower()
        if "v7" in kind or "7x" in kind:
            return 2
    except Exception:
        pass
    return 1


def _pick_block_rows(B: int, emb_dim: int) -> int:
    """Pick the batch tile TB.

    VMEM per pipeline stage (double-buffered):
      output block : 2 * TB * emb_dim * 4 bytes
      t block (TB,1): lane-padded to (TB,128) -> 2 * TB * 512 bytes
    Kept under ~8 MiB so even v7x's 32 MiB default scoped VMEM has headroom,
    while still being large enough to amortize the ~0.35us per-grid-step cost
    on v5e/v6e.
    """
    budget = 8 * 1024 * 1024
    per_row = 2 * emb_dim * 4 + 2 * 512
    cap = min(4096, max(8, _round_down(budget // per_row, 8)))

    # Multi-TensorCore devices: make sure the "parallel" grid axis has at
    # least `ncores` steps so the work is actually sharded across cores.
    ncores = _tensorcores_per_device()
    if ncores >= 2 and B >= 16:
        cap = min(cap, max(8, _round_up(pl.cdiv(B, ncores), 8)))

    if B <= cap:
        # Single block covering the whole batch: block_shape == full dim is
        # always legal, so no padding of B to a multiple of 8 is needed.
        return B

    # Prefer an exact divisor of B close to the cap (avoids a ragged, masked
    # last block); otherwise fall back to the cap and let Pallas mask it.
    for tb in range(_round_down(cap, 8), max(8, cap // 2) - 1, -8):
        if B % tb == 0:
            return tb
    return _round_down(cap, 8)


def _make_timestep_kernel(emb_dim: int, out_dtype):
    half = emb_dim // 2

    def kernel(t_ref, f_ref, out_ref):
        # t_ref:   (TB, 1)       f32 timesteps (already cast in the wrapper)
        # f_ref:   (1, half)     f32 precomputed frequency table
        # out_ref: (TB, emb_dim) out_dtype
        # Exact f32 broadcast multiply (see header: MXU K=1 dot skipped on
        # purpose to avoid bf16 truncation of the phase).
        arg = t_ref[...] * f_ref[...]                       # (TB, half), VPU
        c = jnp.cos(arg)                                    # EUP
        s = jnp.sin(arg)                                    # EUP
        parts = [c, s]
        if emb_dim % 2 == 1:
            parts.append(jnp.zeros((t_ref.shape[0], 1), jnp.float32))
        full = jnp.concatenate(parts, axis=-1)              # in-register concat
        # Single lane-dense, offset-0, full-width store.
        out_ref[...] = full.astype(out_dtype)

    return kernel


def timestep_encode(timesteps: jax.Array, time_emb_dim: int,
                    max_period: int = 10000,
                    out_dtype=jnp.float32) -> jax.Array:
    """JAX/Pallas equivalent of Timestep(time_emb_dim)(timesteps)."""
    assert timesteps.ndim == 1, "timesteps must be a 1D array"
    assert time_emb_dim >= 2, "time_emb_dim must be >= 2"
    B = timesteps.shape[0]
    half = time_emb_dim // 2

    # Hoisted constant frequency table (computed once, outside the kernel).
    freqs = jnp.exp(
        (-math.log(max_period) / half) * jnp.arange(half, dtype=jnp.float32)
    ).reshape(1, half)

    t2d = timesteps.astype(jnp.float32).reshape(B, 1)

    TB = _pick_block_rows(B, time_emb_dim)
    grid = (pl.cdiv(B, TB),)

    kernel = _make_timestep_kernel(time_emb_dim, out_dtype)
    out = pl.pallas_call(
        kernel,
        out_shape=jax.ShapeDtypeStruct((B, time_emb_dim), out_dtype),
        grid=grid,
        in_specs=[
            pl.BlockSpec((TB, 1), lambda i: (i, 0)),
            pl.BlockSpec((1, half), lambda i: (0, 0)),
        ],
        out_specs=pl.BlockSpec((TB, time_emb_dim), lambda i: (i, 0)),
        compiler_params=pltpu.CompilerParams(
            dimension_semantics=("parallel",),
        ),
    )(t2d, freqs)
    # TODO(synk): highest-value follow-up — fuse this sin/cos generation into
    # the first Linear of the downstream timestep MLP so the (B, emb_dim)
    # embedding never round-trips HBM (compute cos/sin per A-tile in that
    # matmul kernel's prologue).
    return out


def _reference(timesteps, emb_dim, max_period=10000):
    half = emb_dim // 2
    freqs = jnp.exp(-math.log(max_period) *
                    jnp.arange(half, dtype=jnp.float32) / half)
    arg = timesteps.astype(jnp.float32)[:, None] * freqs[None, :]
    emb = jnp.concatenate([jnp.cos(arg), jnp.sin(arg)], axis=-1)
    if emb_dim % 2 == 1:
        emb = jnp.pad(emb, ((0, 0), (0, 1)))
    return emb


if __name__ == "__main__":
    key = jax.random.PRNGKey(0)
    k1, k2 = jax.random.split(key)

    # f32 sin/cos of arguments up to ~1e3 can differ by O(1e-4) between
    # implementations purely from range-reduction rounding, so use a tolerance
    # that still catches real bugs (swapped halves, wrong freqs ~ O(1)).
    TOL = 5e-4

    # Case 1: B multiple of 8, even embedding dim (lane-aligned halves).
    B1, D1 = 8, 32
    t1 = jax.random.randint(k1, (B1,), 0, 1000).astype(jnp.int32)
    out1 = jax.block_until_ready(timestep_encode(t1, D1))
    ref1 = _reference(t1, D1)
    assert out1.shape == (B1, D1)
    assert jnp.allclose(out1, ref1, atol=TOL, rtol=TOL)

    # Case 2: ragged batch (block == full dim, no padding) and odd embedding
    # dim (explicit zero pad lane).
    B2, D2 = 5, 33
    t2 = jax.random.randint(k2, (B2,), 0, 1000).astype(jnp.int32)
    out2 = jax.block_until_ready(timestep_encode(t2, D2))
    ref2 = _reference(t2, D2)
    assert out2.shape == (B2, D2)
    assert jnp.allclose(out2, ref2, atol=TOL, rtol=TOL)

    print("KERNEL_OK")
</pallas_src>

<mosaic_0001>
module attributes {stable_mosaic.version = 11 : i64} {
  func.func @kernel(%arg0: i32, %arg1: memref<8x1xf32, #tpu.memory_space<vmem>>, %arg2: memref<1x16xf32, #tpu.memory_space<vmem>>, %arg3: memref<8x32xf32, #tpu.memory_space<vmem>>) attributes {dimension_semantics = [#tpu.dimension_semantics<parallel>], iteration_bounds = array<i64: 1>, scalar_prefetch = 0 : i64, scratch_operands = 0 : i64, tpu.core_type = #tpu.core_type<tc>, window_params = [{transform_indices = @transform_0, window_bounds = array<i64: 8, 1>}, {pipeline_mode = #tpu.pipeline_mode<synchronous>, transform_indices = @transform_1, window_bounds = array<i64: 1, 16>}, {transform_indices = @transform_2, window_bounds = array<i64: 8, 32>}]} {
    %c0 = arith.constant 0 : index
    %c0_0 = arith.constant 0 : index
    %0 = vector.load %arg1[%c0, %c0_0] : memref<8x1xf32, #tpu.memory_space<vmem>>, vector<8x1xf32>
    %c0_1 = arith.constant 0 : index
    %c0_2 = arith.constant 0 : index
    %1 = vector.load %arg2[%c0_1, %c0_2] : memref<1x16xf32, #tpu.memory_space<vmem>>, vector<1x16xf32>
    %2 = vector.broadcast %0 : vector<8x1xf32> to vector<8x16xf32>
    %3 = vector.broadcast %1 : vector<1x16xf32> to vector<8x16xf32>
    %4 = arith.mulf %2, %3 : vector<8x16xf32>
    %5 = math.cos %4 : vector<8x16xf32>
    %6 = math.sin %4 : vector<8x16xf32>
    %7 = tpu.concatenate %5, %6 in 1 : vector<8x16xf32>, vector<8x16xf32> -> vector<8x32xf32>
    %c0_3 = arith.constant 0 : index
    %c0_4 = arith.constant 0 : index
    %8 = vector.load %arg3[%c0_3, %c0_4] : memref<8x32xf32, #tpu.memory_space<vmem>>, vector<8x32xf32>
    tpu.vector_store %arg3[%c0_3, %c0_4], %7 {strides = array<i32>} : memref<8x32xf32, #tpu.memory_space<vmem>>, vector<8x32xf32>,
    return
  }
  func.func @transform_0(%arg0: i32) -> (i32, i32) {
    %c0_i32 = arith.constant 0 : i32
    %c0_i32_0 = arith.constant 0 : i32
    return %arg0, %c0_i32 : i32, i32
  }
  func.func @transform_1(%arg0: i32) -> (i32, i32) {
    %c0_i32 = arith.constant 0 : i32
    %c0_i32_0 = arith.constant 0 : i32
    %c0_i32_1 = arith.constant 0 : i32
    return %c0_i32, %c0_i32_0 : i32, i32
  }
  func.func @transform_2(%arg0: i32) -> (i32, i32) {
    %c0_i32 = arith.constant 0 : i32
    %c0_i32_0 = arith.constant 0 : i32
    return %arg0, %c0_i32 : i32, i32
  }
}

</mosaic_0001>

<bundles_post_ra>
// kernel: tpu_custom_call.1
= control target key start
LH: loop header
LB: loop body
LE: loop exit
PB: predicated region body
PF: predicated region fallthrough
CT: control target
= control target key end

     0   :  { %v399_v1 = vmov 0   ;;  %s493_s0 = inlined_call_operand.vmem [shape: f32[8,1], index: 0, kind: input, shape index: {}]   ;;  %s494_s1 = inlined_call_operand.vmem [shape: f32[1,16], index: 1, kind: input, shape index: {}]   ;;  %s495_s2 = inlined_call_operand.hbm [shape: f32[8,32], index: 2, kind: output, shape index: {}]  }
   0x1   :  { %v12_v0 = vld [vmem:[%s493_s0] sm:$0xff]  ;;  %371 = vset.pattern.permute.xlu0 %v399_v1 }
   0x2   :  { %16 = vperm.xlu0 %371, %v12_v0  }
   0x3   :  { %7 = vsyncpa [#allocation3], 0  ;;  %v372_v2 = vld [vmem:[%s494_s1] ss:$0 sm:$0xff]  ;;  %v400_v16 = vmov 683565275  }
   0x4   :  { %v401_v18 = vmov 2475754826   ;;  %v402_v21 = vmov 2131351028   ;;  %v403_v24 = vmov 2102212464  }
   0x5   :  { %v404_v27 = vmov 920167782   ;;  %v405_v30 = vmov 1326507024   ;;  %s406_s0 = smov 16   ;;  %s407_s1 = smov [#allocation2]  }
   0x6   :  { %s345_s13 = sshll.u32 %s407_s1, 4  ;;  %s347_s16 = sshll.u32 %s495_s2, 4  ;;  %s346_s13 = int_to_ptr.vmem [resolvable:$true] %s345_s13  ;;  %s348_s16 = int_to_ptr.hbm [resolvable:$true] %s347_s16 }
  0x74   :  { %v17_v3 = vpop.permute.xlu0 %16 }
  0x75   :  { %v430_v4 = vmul.f32 %v372_v2, %v17_v3 }
  0x77   :  { %v26_v5 = vand.u32 2139095040, %v430_v4  ;;  %v23_v8 = vand.u32 2147483647, %v430_v4  ;;  %vm25_vm12 = vcmp.lt.s32.totalorder %v430_v4, 0 }
  0x79   :  { %v27_v6 = vshrl.u32 %v26_v5, 23  ;;  %v30_v10 = vand.u32 8388607, %v23_v8  ;;  %vm24_vm13 = vcmp.le.f32.partialorder %v23_v8, 0.7853982 }
  0x7b   :  { %v356_v7 = vadd.s32 4294967169, %v27_v6  ;;  %v31_v14 = vor.u32 8388608, %v30_v10 }
  0x7d   :  { %v33_v9 = vadd.s32 1, %v356_v7  ;;  %v447_v37 = vshll.u32 %v31_v14, 8 }
  0x7f   :  { %vm34_vm0 = vcmp.gt.s32.totalorder %v33_v9, 0  ;;  %v72_v46 = vand.u32 65535, %v447_v37  ;;  %v73_v51 = vshrl.u32 %v447_v37, 16 }
  0x80   :  { %v35_v11 = vsel %vm34_vm0, %v33_v9, 0 }
  0x81   :  { %v37_v12 = vand.u32 31, %v35_v11  ;;  %v438_v15 = vshrl.u32 %v35_v11, 5 }
  0x83   :  { %v436_v13 = vsub.s32 32, %v37_v12  ;;  %v40_v17 = vshll.u32 %v400_v16, %v37_v12  ;;  %v43_v19 = vshll.u32 %v401_v18, %v37_v12  ;;  %v46_v23 = vshll.u32 %v402_v21, %v37_v12 }
  0x84   :  { %v49_v26 = vshll.u32 %v403_v24, %v37_v12  ;;  %v52_v29 = vshll.u32 %v404_v27, %v37_v12  ;;  %vm55_vm1 = vcmp.lt.s32.totalorder %v438_v15, 1  ;;  %vm58_vm2 = vcmp.lt.s32.totalorder %v438_v15, 4 }
  0x85   :  { %v41_v20 = vshrl.u32 %v401_v18, %v436_v13  ;;  %v44_v22 = vshrl.u32 %v402_v21, %v436_v13  ;;  %v47_v25 = vshrl.u32 %v403_v24, %v436_v13  ;;  %v50_v28 = vshrl.u32 %v404_v27, %v436_v13 }
  0x86   :  { %v53_v31 = vshrl.u32 %v405_v30, %v436_v13  ;;  %vm57_vm3 = vcmp.lt.s32.totalorder %v438_v15, 3  ;;  %vm56_vm4 = vcmp.lt.s32.totalorder %v438_v15, 2  ;;  %v39_v10 = vshrl.u32 %v400_v16, %v436_v13 }
  0x87   :  { %v42_v32 = vor.u32 %v41_v20, %v40_v17  ;;  %v45_v33 = vor.u32 %v44_v22, %v43_v19  ;;  %v48_v34 = vor.u32 %v47_v25, %v46_v23  ;;  %v51_v35 = vor.u32 %v50_v28, %v49_v26 }
  0x88   :  { %v54_v36 = vor.u32 %v53_v31, %v52_v29 }
  0x89   :  { %v63_v38 = vsel %vm55_vm1, %v42_v32, %v45_v33  ;;  %v67_v39 = vsel %vm55_vm1, %v45_v33, %v48_v34  ;;  %v64_v40 = vsel %vm58_vm2, %v51_v35, 920167782  ;;  %v60_v3 = vsel %vm58_vm2, %v48_v34, 2102212464 }
  0x8a   :  { %v68_v41 = vsel %vm58_vm2, %v54_v36, 1326507024  ;;  %v65_v42 = vsel %vm57_vm3, %v48_v34, %v64_v40  ;;  %v59_v20 = vsel %vm55_vm1, %v39_v10, %v42_v32  ;;  %v61_v21 = vsel %vm57_vm3, %v45_v33, %v60_v3 }
  0x8b   :  { %v69_v43 = vsel %vm57_vm3, %v51_v35, %v68_v41  ;;  %v66_v44 = vsel %vm56_vm4, %v63_v38, %v65_v42  ;;  %v62_v13 = vsel %vm56_vm4, %v59_v20, %v61_v21 }
  0x8c   :  { %v70_v45 = vsel %vm56_vm4, %v67_v39, %v69_v43  ;;  %v96_v49 = vand.u32 65535, %v66_v44  ;;  %v97_v50 = vshrl.u32 %v66_v44, 16  ;;  %v116_v28 = vmul.u32 %v447_v37, %v62_v13 }
  0x8d   :  { %v74_v47 = vand.u32 65535, %v70_v45  ;;  %v75_v48 = vshrl.u32 %v70_v45, 16  ;;  %vm166_vm4 = vweird.f32 %v430_v4 }
  0x8e   :  { %v99_v53 = vmul.u32 %v97_v50, %v72_v46  ;;  %v100_v55 = vmul.u32 %v96_v49, %v73_v51  ;;  %v98_v58 = vmul.u32 %v96_v49, %v72_v46  ;;  %v101_v61 = vmul.u32 %v97_v50, %v73_v51 }
  0x8f   :  { %v77_v52 = vmul.u32 %v75_v48, %v72_v46  ;;  %v78_v54 = vmul.u32 %v74_v47, %v73_v51  ;;  %v76_v56 = vmul.u32 %v74_v47, %v72_v46  ;;  %v79_v60 = vmul.u32 %v75_v48, %v73_v51 }
  0x90   :  { %v102_v59 = vshll.u32 %v99_v53, 16  ;;  %v104_v63 = vshll.u32 %v100_v55, 16  ;;  %v103_v18 = vshrl.u32 %v99_v53, 16  ;;  %v105_v24 = vshrl.u32 %v100_v55, 16 }
  0x91   :  { %v80_v57 = vshll.u32 %v77_v52, 16  ;;  %v82_v62 = vshll.u32 %v78_v54, 16  ;;  %v81_v14 = vshrl.u32 %v77_v52, 16  ;;  %v83_v22 = vshrl.u32 %v78_v54, 16 }
  0x92   :  { %vm106_vm6 = vc.u32 %v98_v58, %v102_v59  ;;  %v108_v2 = vadd.s32 %v102_v59, %v98_v58 }
  0x93   :  { %vm84_vm5 = vc.u32 %v76_v56, %v80_v57  ;;  %v86_v0 = vadd.s32 %v80_v57, %v76_v56  ;;  %v107_v6 = vsel %vm106_vm6, 1, %v399_v1  ;;  %vm338_vm6 = vcmask 261120  }
  0x94   :  { %v85_v5 = vsel %vm84_vm5, 1, %v399_v1  ;;  %v109_v9 = vadd.s32 %v107_v6, %v101_v61  ;;  %vm110_vm8 = vc.u32 %v108_v2, %v104_v63  ;;  %v112_v26 = vadd.s32 %v108_v2, %v104_v63 }
  0x95   :  { %v87_v7 = vadd.s32 %v85_v5, %v79_v60  ;;  %vm88_vm7 = vc.u32 %v86_v0, %v82_v62  ;;  %v111_v12 = vsel %vm110_vm8, 1, %v399_v1  ;;  %vm336_vm5 = vcmask 130048  }
  0x96   :  { %v89_v11 = vsel %vm88_vm7, 1, %v399_v1  ;;  %v113_v19 = vadd.s32 %v111_v12, %v109_v9 }
  0x97   :  { %v91_v17 = vadd.s32 %v89_v11, %v87_v7 }
  0x98   :  { %v114_v25 = vadd.s32 %v113_v19, %v103_v18 }
  0x99   :  { %v92_v23 = vadd.s32 %v91_v17, %v81_v14 }
  0x9a   :  { %v115_v1 = vadd.s32 %v114_v25, %v105_v24 }
  0x9b   :  { %v93_v16 = vadd.s32 %v92_v23, %v83_v22 }
  0x9c   :  { %v119_v27 = vadd.s32 1, %v115_v1 }
  0x9d   :  { %vm118_vm9 = vc.u32 %v93_v16, %v112_v26  ;;  %v117_v40 = vadd.s32 %v112_v26, %v93_v16 }
  0x9e   :  { %v120_v29 = vsel %vm118_vm9, %v119_v27, %v115_v1 }
  0x9f   :  { %v121_v30 = vadd.s32 %v120_v29, %v116_v28 }
  0xa1   :  { %v122_v31 = vadd.s32 536870912, %v121_v30 }
  0xa3   :  { %v123_v32 = vshrl.u32 %v122_v31, 30 }
  0xa5   :  { %v124_v34 = vshll.u32 %v123_v32, 30  ;;  %v147_v53 = vsub.s32 4, %v123_v32 }
  0xa7   :  { %v125_v33 = vsub.s32 %v121_v30, %v124_v34  ;;  %v148_v58 = vsel %vm25_vm12, %v147_v53, %v123_v32 }
  0xa8   :  { %v150_v61 = vsel %vm24_vm13, 0, %v148_v58 }
  0xa9   :  { %vm126_vm10 = vcmp.lt.s32.totalorder %v125_v33, 0  ;;  %v127_v35 = vsub.s32 0, %v125_v33  ;;  %v321_v3 = vadd.s32 3, %v150_v61  ;;  %v167_v7 = vand.u32 3, %v150_v61 }
  0xab   :  { %v128_v36 = vsel %vm126_vm10, %v127_v35, %v125_v33  ;;  %v322_v10 = vand.u32 3, %v321_v3  ;;  %vm172_vm14 = vcmp.eq.s32.totalorder %v167_v7, 2  ;;  %vm168_vm15 = vcmp.lt.s32.totalorder %v167_v7, 2 }
  0xac   :  { %v129_v38 = vclz %v128_v36  ;;  %vm169_vm0 = vcmp.eq.s32.totalorder %v167_v7, 0 }
  0xad   :  { %vm324_vm1 = vcmp.eq.s32.totalorder %v322_v10, 0  ;;  %vm327_vm2 = vcmp.eq.s32.totalorder %v322_v10, 2  ;;  %vm323_vm3 = vcmp.lt.s32.totalorder %v322_v10, 2 }
  0xae   :  { %v357_v39 = vadd.s32 4294967294, %v129_v38 }
  0xb0   :  { %vm358_vm11 = vcmp.lt.s32.totalorder %v357_v39, 0 }
  0xb1   :  { %v132_v15 = vsel %vm358_vm11, 0, %v357_v39 }
  0xb2   :  { %v133_v41 = vsub.s32 32, %v132_v15  ;;  %v137_v42 = vsub.s32 4294967266, %v132_v15  ;;  %v134_v43 = vshll.u32 %v125_v33, %v132_v15 }
  0xb4   :  { %v135_v44 = vshrl.u32 %v117_v40, %v133_v41  ;;  %v138_v45 = vadd.s32 127, %v137_v42 }
  0xb6   :  { %v136_v37 = vor.u32 %v135_v44, %v134_v43  ;;  %v139_v46 = vshll.u32 %v138_v45, 23 }
  0xb8   :  { %v140_v47 = vor.u32 4788187, %v139_v46  ;;  %v143_v49 = vcvt.s32.f32 %v136_v37 }
  0xba   :  { %v141_v48 = vand.u32 2147483647, %v140_v47 }
  0xbc   :  { %v144_v50 = vmul.f32 %v143_v49, %v141_v48 }
  0xbe   :  { %v145_v51 = vxor.u32 2147483648, %v144_v50 }
  0xc0   :  { %v146_v52 = vsel %vm25_vm12, %v145_v51, %v144_v50 }
  0xc1   :  { %v149_v54 = vsel %vm24_vm13, %v430_v4, %v146_v52 }
  0xc2   :  { %v151_v55 = vmul.f32 %v149_v54, %v149_v54 }
  0xc4   :  { %v152_v56 = vmul.f32 -0.001358992, %v151_v55  ;;  %v159_v57 = vmul.f32 -0.00019511016, %v151_v55 }
  0xc6   :  { %v153_v59 = vadd.f32 0.041655596, %v152_v56  ;;  %v160_v60 = vadd.f32 0.008332121, %v159_v57 }
  0xc8   :  { %v154_v62 = vmul.f32 %v153_v59, %v151_v55  ;;  %v161_v63 = vmul.f32 %v160_v60, %v151_v55 }
  0xca   :  { %v155_v0 = vadd.f32 -0.4999988, %v154_v62  ;;  %v162_v2 = vadd.f32 -0.16666654, %v161_v63 }
  0xcc   :  { %v156_v5 = vmul.f32 %v155_v0, %v151_v55  ;;  %v163_v6 = vmul.f32 %v162_v2, %v151_v55 }
  0xce   :  { %v157_v8 = vadd.f32 1.0, %v156_v5  ;;  %v164_v9 = vadd.f32 1.0, %v163_v6 }
  0xd0   :  { %v165_v11 = vmul.f32 %v164_v9, %v149_v54  ;;  %v173_v12 = vxor.u32 2147483648, %v157_v8 }
  0xd2   :  { %v170_v14 = vxor.u32 2147483648, %v165_v11  ;;  %v174_v17 = vsel %vm172_vm14, %v173_v12, %v165_v11  ;;  %v329_v19 = vsel %vm327_vm2, %v173_v12, %v165_v11 }
  0xd4   :  { %v326_v18 = vsel %vm324_vm1, %v157_v8, %v170_v14  ;;  %v171_v20 = vsel %vm169_vm0, %v157_v8, %v170_v14 }
  0xd5   :  { %v330_v21 = vsel %vm323_vm3, %v326_v18, %v329_v19  ;;  %v175_v22 = vsel %vm168_vm15, %v171_v20, %v174_v17 }
  0xd6   :  { %v331_v23 = vsel %vm166_vm4, nan, %v330_v21  ;;  %v176_v24 = vsel %vm166_vm4, nan, %v175_v22 }
  0xd7   :  { %333 = vrot.lane.b32.xlu0 %v331_v23, %s406_s0 }
 0x149   :  { %v334_v25 = vpop.permute.xlu0 %333 }
 0x14a   :  { %v337_v13 = vsel %vm336_vm5, %v176_v24, %v334_v25 }
 0x14b   :  { %339 = vst.msk [vmem:[#allocation2] sm:$0xff] %vm338_vm6, %v337_v13 }
 0x14c   :  { %350 = dma.vmem_to_hbm [thread:$0]  %s346_s13, 128, %s348_s16, [#allocation3]  }
 0x14d   :  { %397 = dma.done.wait [#allocation3], 128  }
 0x14e   :  { %398 = vsyncadd [#allocation3], 4294967168 }
 0x14f   :  { %355 = vsyncpa [#allocation3], 1 }

</bundles_post_ra>
